<compile_context>
chip_gen: v6e
topology: v6e:2x2x1
jax: 0.10.0
libtpu: 0.0.40
codegen_flags: <defaults>
</compile_context>

<pallas_src>
import functools

import jax
import jax.numpy as jnp
from jax.experimental import pallas as pl
from jax.experimental.pallas import tpu as pltpu


def mlp_probs_kernel(x_ref, w1_ref, b1_ref, w2_ref, b2_ref, o_ref):
    # fc1: (TILE_B, D_in) @ (D_in, 32), f32 MXU accumulation + bias, then ReLU.
    h = jnp.dot(x_ref[...], w1_ref[...], preferred_element_type=jnp.float32)
    h = jnp.maximum(h + b1_ref[...], 0.0)
    # fc2: (TILE_B, 32) @ (32, D_out), kept in f32 (no bf16 round-trip).
    z = jnp.dot(h, w2_ref[...], preferred_element_type=jnp.float32) + b2_ref[...]
    # Row softmax (F.softmax on a 2D tensor -> dim=1). Exact divide so each row
    # sums to 1 within f32 rounding (approx reciprocal was too coarse).
    z = z - jnp.max(z, axis=-1, keepdims=True)
    e = jnp.exp(z)
    o_ref[...] = (e / jnp.sum(e, axis=-1, keepdims=True)).astype(o_ref.dtype)


@functools.partial(jax.jit, static_argnames=("tile_b",))
def mlp_probs_forward(x, w1, b1, w2, b2, *, tile_b=4096):
    """x: (B, D_in), w1: (D_in, 32), b1: (1, 32), w2: (32, D_out), b2: (1, D_out)."""
    B, d_in = x.shape
    d_hidden = w1.shape[1]
    d_out = w2.shape[1]

    x = x.astype(jnp.float32)
    w1 = w1.astype(jnp.float32)
    b1 = b1.astype(jnp.float32)
    w2 = w2.astype(jnp.float32)
    b2 = b2.astype(jnp.float32)

    # Tile selection: if the whole batch fits in one tile, use a single full block
    # (block shape == array shape, so no 8-row divisibility constraint). Otherwise
    # use a multiple-of-8 tile and let Pallas handle the ragged last block.
    if B <= tile_b:
        tile_b_eff = B
    else:
        tile_b_eff = max(8, (tile_b // 8) * 8)
    grid = (pl.cdiv(B, tile_b_eff),)

    cost = pl.CostEstimate(
        flops=2 * B * (d_in * d_hidden + d_hidden * d_out),
        transcendentals=B * d_out,
        bytes_accessed=(B * d_in * 4                                   # x read
                        + (d_in * d_hidden + d_hidden * d_out) * 4     # weights
                        + (d_hidden + d_out) * 4                       # biases
                        + B * d_out * 4),                              # out write
    )

    return pl.pallas_call(
        mlp_probs_kernel,
        out_shape=jax.ShapeDtypeStruct((B, d_out), jnp.float32),
        grid_spec=pltpu.PrefetchScalarGridSpec(
            num_scalar_prefetch=0,
            grid=grid,
            in_specs=[
                pl.BlockSpec((tile_b_eff, d_in), lambda i: (i, 0)),    # x tile
                pl.BlockSpec((d_in, d_hidden), lambda i: (0, 0)),      # w1 (resident)
                pl.BlockSpec((1, d_hidden), lambda i: (0, 0)),         # b1 (resident)
                pl.BlockSpec((d_hidden, d_out), lambda i: (0, 0)),     # w2 (resident)
                pl.BlockSpec((1, d_out), lambda i: (0, 0)),            # b2 (resident)
            ],
            out_specs=pl.BlockSpec((tile_b_eff, d_out), lambda i: (i, 0)),
        ),
        compiler_params=pltpu.CompilerParams(
            dimension_semantics=("parallel",),       # megacore sharding on v7x
            vmem_limit_bytes=32 * 1024 * 1024,       # safe on v5e/v6e/v7x
        ),
        cost_estimate=cost,
    )(x, w1, b1, w2, b2)


def init_params(key, d_in, d_hidden, d_out):
    """Deterministic init mimicking nn.Linear's uniform(-1/sqrt(fan_in), 1/sqrt(fan_in))."""
    k1, k2, k3, k4 = jax.random.split(key, 4)
    lim1 = 1.0 / jnp.sqrt(d_in)
    lim2 = 1.0 / jnp.sqrt(d_hidden)
    w1 = jax.random.uniform(k1, (d_in, d_hidden), jnp.float32, -lim1, lim1)
    b1 = jax.random.uniform(k2, (1, d_hidden), jnp.float32, -lim1, lim1)
    w2 = jax.random.uniform(k3, (d_hidden, d_out), jnp.float32, -lim2, lim2)
    b2 = jax.random.uniform(k4, (1, d_out), jnp.float32, -lim2, lim2)
    return w1, b1, w2, b2


def _reference(x, w1, b1, w2, b2):
    h = jnp.maximum(x @ w1 + b1, 0.0)
    return jax.nn.softmax(h @ w2 + b2, axis=-1)


if __name__ == "__main__":
    key = jax.random.PRNGKey(0)
    kx, kp = jax.random.split(key)

    B, D_IN, D_HIDDEN, D_OUT = 8, 16, 32, 4
    x = jax.random.normal(kx, (B, D_IN), jnp.float32)
    w1, b1, w2, b2 = init_params(kp, D_IN, D_HIDDEN, D_OUT)

    out = mlp_probs_forward(x, w1, b1, w2, b2)
    jax.block_until_ready(out)

    ref = _reference(x, w1, b1, w2, b2)
    assert out.shape == (B, D_OUT)
    assert jnp.allclose(out, ref, atol=2e-2, rtol=2e-2)
    assert jnp.allclose(jnp.sum(out, axis=-1), 1.0, atol=1e-4)

    # Second check: multi-step grid with a ragged last block (B=70, tile_b=32 ->
    # grid=(3,), last block covers only 6 valid rows).
    x2 = jax.random.normal(jax.random.PRNGKey(1), (70, D_IN), jnp.float32)
    out2 = mlp_probs_forward(x2, w1, b1, w2, b2, tile_b=32)
    jax.block_until_ready(out2)
    ref2 = _reference(x2, w1, b1, w2, b2)
    assert out2.shape == (70, D_OUT)
    assert jnp.allclose(out2, ref2, atol=2e-2, rtol=2e-2)
    assert jnp.allclose(jnp.sum(out2, axis=-1), 1.0, atol=1e-4)

    print("KERNEL_OK")
</pallas_src>

<mosaic_0001>
module attributes {stable_mosaic.version = 11 : i64} {
  func.func @mlp_probs_kernel(%arg0: i32, %arg1: memref<8x16xf32, #tpu.memory_space<vmem>>, %arg2: memref<16x32xf32, #tpu.memory_space<vmem>>, %arg3: memref<1x32xf32, #tpu.memory_space<vmem>>, %arg4: memref<32x4xf32, #tpu.memory_space<vmem>>, %arg5: memref<1x4xf32, #tpu.memory_space<vmem>>, %arg6: memref<8x4xf32, #tpu.memory_space<vmem>>) attributes {dimension_semantics = [#tpu.dimension_semantics<parallel>], iteration_bounds = array<i64: 1>, scalar_prefetch = 0 : i64, scratch_operands = 0 : i64, tpu.core_type = #tpu.core_type<tc>, window_params = [{transform_indices = @transform_0, window_bounds = array<i64: 8, 16>}, {pipeline_mode = #tpu.pipeline_mode<synchronous>, transform_indices = @transform_1, window_bounds = array<i64: 16, 32>}, {pipeline_mode = #tpu.pipeline_mode<synchronous>, transform_indices = @transform_2, window_bounds = array<i64: 1, 32>}, {pipeline_mode = #tpu.pipeline_mode<synchronous>, transform_indices = @transform_3, window_bounds = array<i64: 32, 4>}, {pipeline_mode = #tpu.pipeline_mode<synchronous>, transform_indices = @transform_4, window_bounds = array<i64: 1, 4>}, {transform_indices = @transform_5, window_bounds = array<i64: 8, 4>}]} {
    %c0 = arith.constant 0 : index
    %c0_0 = arith.constant 0 : index
    %0 = vector.load %arg1[%c0, %c0_0] : memref<8x16xf32, #tpu.memory_space<vmem>>, vector<8x16xf32>
    %c0_1 = arith.constant 0 : index
    %c0_2 = arith.constant 0 : index
    %1 = vector.load %arg2[%c0_1, %c0_2] : memref<16x32xf32, #tpu.memory_space<vmem>>, vector<16x32xf32>
    %cst = arith.constant dense<0.000000e+00> : vector<8x32xf32>
    %2 = tpu.matmul %0, %1, %cst {dimension_numbers = #tpu.dot_dimension_numbers<[1], [0], [0], [1], [0, 0, 1, 1], [], []>} : vector<8x16xf32>, vector<16x32xf32>, vector<8x32xf32> -> vector<8x32xf32>
    %c0_3 = arith.constant 0 : index
    %c0_4 = arith.constant 0 : index
    %3 = vector.load %arg3[%c0_3, %c0_4] : memref<1x32xf32, #tpu.memory_space<vmem>>, vector<1x32xf32>
    %4 = vector.broadcast %3 : vector<1x32xf32> to vector<8x32xf32>
    %5 = arith.addf %2, %4 : vector<8x32xf32>
    %cst_5 = arith.constant 0.000000e+00 : f32
    %6 = vector.broadcast %cst_5 : f32 to vector<8x32xf32>
    %7 = arith.maximumf %5, %6 : vector<8x32xf32>
    %c0_6 = arith.constant 0 : index
    %c0_7 = arith.constant 0 : index
    %8 = vector.load %arg4[%c0_6, %c0_7] : memref<32x4xf32, #tpu.memory_space<vmem>>, vector<32x4xf32>
    %cst_8 = arith.constant dense<0.000000e+00> : vector<8x4xf32>
    %9 = tpu.matmul %7, %8, %cst_8 {dimension_numbers = #tpu.dot_dimension_numbers<[1], [0], [0], [1], [0, 0, 1, 1], [], []>} : vector<8x32xf32>, vector<32x4xf32>, vector<8x4xf32> -> vector<8x4xf32>
    %c0_9 = arith.constant 0 : index
    %c0_10 = arith.constant 0 : index
    %10 = vector.load %arg5[%c0_9, %c0_10] : memref<1x4xf32, #tpu.memory_space<vmem>>, vector<1x4xf32>
    %11 = vector.broadcast %10 : vector<1x4xf32> to vector<8x4xf32>
    %12 = arith.addf %9, %11 : vector<8x4xf32>
    %cst_11 = arith.constant dense<0xFF800000> : vector<8xf32>
    %13 = vector.multi_reduction <maximumf>, %12, %cst_11 [1] : vector<8x4xf32> to vector<8xf32>
    %14 = vector.shape_cast %13 : vector<8xf32> to vector<8x1xf32>
    %15 = vector.broadcast %14 : vector<8x1xf32> to vector<8x4xf32>
    %16 = arith.subf %12, %15 : vector<8x4xf32>
    %17 = math.exp %16 : vector<8x4xf32>
    %cst_12 = arith.constant dense<0.000000e+00> : vector<8xf32>
    %18 = vector.multi_reduction <add>, %17, %cst_12 [1] : vector<8x4xf32> to vector<8xf32>
    %19 = vector.shape_cast %18 : vector<8xf32> to vector<8x1xf32>
    %20 = vector.broadcast %19 : vector<8x1xf32> to vector<8x4xf32>
    %21 = arith.divf %17, %20 : vector<8x4xf32>
    %c0_13 = arith.constant 0 : index
    %c0_14 = arith.constant 0 : index
    %22 = vector.load %arg6[%c0_13, %c0_14] : memref<8x4xf32, #tpu.memory_space<vmem>>, vector<8x4xf32>
    tpu.vector_store %arg6[%c0_13, %c0_14], %21 {strides = array<i32>} : memref<8x4xf32, #tpu.memory_space<vmem>>, vector<8x4xf32>,
    return
  }
  func.func @transform_0(%arg0: i32) -> (i32, i32) {
    %c0_i32 = arith.constant 0 : i32
    %c0_i32_0 = arith.constant 0 : i32
    return %arg0, %c0_i32 : i32, i32
  }
  func.func @transform_1(%arg0: i32) -> (i32, i32) {
    %c0_i32 = arith.constant 0 : i32
    %c0_i32_0 = arith.constant 0 : i32
    %c0_i32_1 = arith.constant 0 : i32
    return %c0_i32, %c0_i32_0 : i32, i32
  }
  func.func @transform_2(%arg0: i32) -> (i32, i32) {
    %c0_i32 = arith.constant 0 : i32
    %c0_i32_0 = arith.constant 0 : i32
    %c0_i32_1 = arith.constant 0 : i32
    return %c0_i32, %c0_i32_0 : i32, i32
  }
  func.func @transform_3(%arg0: i32) -> (i32, i32) {
    %c0_i32 = arith.constant 0 : i32
    %c0_i32_0 = arith.constant 0 : i32
    %c0_i32_1 = arith.constant 0 : i32
    return %c0_i32, %c0_i32_0 : i32, i32
  }
  func.func @transform_4(%arg0: i32) -> (i32, i32) {
    %c0_i32 = arith.constant 0 : i32
    %c0_i32_0 = arith.constant 0 : i32
    %c0_i32_1 = arith.constant 0 : i32
    return %c0_i32, %c0_i32_0 : i32, i32
  }
  func.func @transform_5(%arg0: i32) -> (i32, i32) {
    %c0_i32 = arith.constant 0 : i32
    %c0_i32_0 = arith.constant 0 : i32
    return %arg0, %c0_i32 : i32, i32
  }
}

</mosaic_0001>

<bundles_post_ra>
// kernel: mlp_probs_forward.1
= control target key start
LH: loop header
LB: loop body
LE: loop exit
PB: predicated region body
PF: predicated region fallthrough
CT: control target
= control target key end

     0   :  { %v243_v0 = vmov 0.0   ;;  %vm244_vm0 = vmmov 0   ;;  %vm30_vm1 = vcmask 130048   ;;  %vm116_vm2 = vcmask 261120   ;;  %s308_s1 = inlined_call_operand.vmem [shape: f32[16,32], index: 1, kind: input, shape index: {}]   ;;  %s309_s0 = inlined_call_operand.vmem [shape: f32[8,16], index: 0, kind: input, shape index: {}]   ;;  %s310_s3 = inlined_call_operand.vmem [shape: f32[32,4], index: 3, kind: input, shape index: {}]   ;;  %s311_s2 = inlined_call_operand.vmem [shape: f32[1,32], index: 2, kind: input, shape index: {}]   ;;  %s312_s4 = inlined_call_operand.vmem [shape: f32[1,4], index: 4, kind: input, shape index: {}]   ;;  %s313_s5 = inlined_call_operand.vmem [shape: f32[8,4], index: 5, kind: output, shape index: {}]  }
   0x1   :  { %219 = vmatprep.subr.mxu0 %v243_v0  ;;  %v22_v1 = vld [vmem:[%s308_s1 + $0x8] sm:$0xff]  ;;  %v21_v2 = vld [vmem:[%s308_s1] sm:$0xff]  ;;  %223 = vmatprep.mubr.msk.f32.mxu0 %vm244_vm0, %v243_v0  ;;  %v108_v4 = vld [vmem:[%s310_s3 + $0x18] sm:$0xff]  ;;  %vm190_vm3 = vcmask 31744  }
   0x2   :  { %220 = vmatpush3.msra.mxu0 %v22_v1  ;;  %v20_v3 = vld [vmem:[%s309_s0] sm:$0xff]  ;;  %226 = vmatprep.subr.mxu1 %v243_v0  ;;  %v107_v5 = vld [vmem:[%s310_s3 + $0x10] sm:$0xff]  ;;  %v106_v6 = vld [vmem:[%s310_s3 + $0x8] sm:$0xff] }
   0x3   :  { %221 = vmatprep.subr.mxu0 %v243_v0  ;;  %227 = vmatpush3.msra.mxu1 %v108_v4  ;;  %v105_v7 = vld [vmem:[%s310_s3] sm:$0xff] }
   0x4   :  { %222 = vmatpush3.msra.mxu0 %v21_v2  ;;  %228 = vmatprep.subr.mxu1 %v243_v0  ;;  %v207_v8 = vld [vmem:[%s311_s2] ss:$0 sm:$0xff] }
   0x5   :  { %224 = vmatmul.mubr.msk.f32.vlgmr.msra.gmra.mxu0 %vm30_vm1, %v20_v3  ;;  %234 = vmatprep.mubr.msk.f32.mxu1 %vm244_vm0, %v243_v0  ;;  %v209_v13 = vld [vmem:[%s312_s4] ss:$0 sm:$0xff] }
   0x6   :  { %229 = vmatpush3.msra.mxu1 %v107_v5 }
   0x7   :  { %230 = vmatprep.subr.mxu1 %v243_v0 }
   0x8   :  { %231 = vmatpush3.msra.mxu1 %v106_v6 }
   0x9   :  { %232 = vmatprep.subr.mxu1 %v243_v0 }
   0xa   :  { %233 = vmatpush3.msra.mxu1 %v105_v7 }
  0xc5   :  { %v100_v9 = vpop.f32.mrf.mxu0 }
  0xc6   :  { %v101_v10 = vadd.f32 %v207_v8, %v100_v9 }
  0xc7   :  { %v225_v11 = vpop.f32.mrf.mxu0 }
  0xc8   :  { %v104_v12 = vmax.f32 %v101_v10, 0.0 }
  0xca   :  { %235 = vmatmul.mubr.msk.f32.vlgmr.msra.gmra.mxu1 %vm116_vm2, %v104_v12 }
 0x18a   :  { %v186_v14 = vpop.f32.mrf.mxu1 }
 0x18b   :  { %v187_v15 = vadd.f32 %v209_v13, %v186_v14 }
 0x18c   :  { %v236_v16 = vpop.f32.mrf.mxu1 }
 0x18d   :  { %v191_v17 = vsel %vm190_vm3, %v187_v15, -inf }
 0x18e   :  { %192 = vmax.xlane.f32.xlu0 %v191_v17 }
 0x217   :  { %v193_v18 = vpop.xlane.xlu0 %192 }
 0x218   :  { %v194_v19 = vsub.f32 %v187_v15, %v193_v18 }
 0x21a   :  { %v195_v20 = vmul.f32 1.442695, %v194_v19 }
 0x21c   :  { %239 = vpow2.f32 %v195_v20 }
 0x229   :  { %v240_v21 = vpop.eup %239 }
 0x22a   :  { %v197_v22 = vsel %vm190_vm3, %v240_v21, 0.0 }
 0x22b   :  { %198 = vadd.xlane.f32.xlu0 %v197_v22 }
 0x2b4   :  { %v199_v23 = vpop.xlane.xlu0 %198 }
 0x2b5   :  { %241 = vrcp.f32 %v199_v23 }
 0x2c2   :  { %v242_v24 = vpop.eup %241 }
 0x2c3   :  { %v201_v25 = vmul.f32 %v242_v24, %v240_v21 }
 0x2c5   :  { %202 = vst.msk [vmem:[%s313_s5] sm:$0xff] %vm190_vm3, %v201_v25 }

</bundles_post_ra>
